<compile_context>
chip_gen: v6e
topology: v6e:2x2x1
jax: 0.10.0
libtpu: 0.0.40
codegen_flags: <defaults>
</compile_context>

<pallas_src>
import numpy as np
import jax
import jax.numpy as jnp
from jax.experimental import pallas as pl
from jax.experimental.pallas import tpu as pltpu


def _round_up(x, m):
    return ((x + m - 1) // m) * m


def _unit2mel_cond_kernel(units_ref, fcond_ref, bias_ref,
                          w_unit_ref, w_fv_ref, out_ref):
    # units_ref: (1, TT, C)    fcond_ref: (1, TT, 2)    bias_ref: (1, 1, Hp)
    # w_unit_ref: (C, Hp)      w_fv_ref: (2, Hp)        out_ref: (1, TT, Hp)
    x = jnp.dot(units_ref[0], w_unit_ref[...],
                preferred_element_type=jnp.float32)            # (TT, Hp)
    x = x + jnp.dot(fcond_ref[0], w_fv_ref[...],
                    preferred_element_type=jnp.float32)        # f0 + volume embeds
    x = x + bias_ref[0]                                        # all static terms
    out_ref[0] = x.astype(out_ref.dtype)


def unit2mel_forward(units, f0, volume, spk_id, aug_shift, params, *,
                     tile_t=512, vmem_limit_bytes=64 << 20,
                     compute_dtype=jnp.float32, out_dtype=jnp.float32):
    """Pallas implementation of the Unit2Mel conditioning path.

    units:     (B, T, C) float32
    f0:        (B, T, 1) float32
    volume:    (B, T, 1) float32
    spk_id:    (B, 1)    int32
    aug_shift: (B, 1, 1) float32

    For bandwidth-bound deployments pass compute_dtype/out_dtype=jnp.bfloat16.
    """
    B, T, C = units.shape
    H = params["w_unit"].shape[1]

    # ---- wrapper-side fusion: fold every static per-batch term into one bias ----
    spk_vec = params["spk_table"][spk_id[:, 0]]                         # (B, H)
    bias = (params["b_unit"] + params["b_f0"] + params["b_vol"]
            + spk_vec
            + (aug_shift[:, :, 0] / 5.0) @ params["w_aug"])             # (B, H)
    bias = bias.reshape(B, 1, H).astype(jnp.float32)

    # ---- f0/volume: two lane-broadcast muls become one tiny (TT,2)@(2,H) matmul ----
    # NOTE: log1p(f0/700) assumes f0 > -700 Hz (always true for real F0).
    fcond = jnp.concatenate(
        [jnp.log1p(f0 * (1.0 / 700.0)), volume], axis=-1)               # (B, T, 2)
    w_fv = jnp.concatenate([params["w_f0"], params["w_vol"]], axis=0)   # (2, H)

    # ---- tiling / padding: TT multiple of 8; H padded to lane-dense 128 ----
    TT = _round_up(min(int(tile_t), _round_up(T, 8)), 8)
    T_pad = _round_up(T, TT)
    Hp = _round_up(H, 128)

    units_p = units.astype(compute_dtype)
    fcond_p = fcond.astype(compute_dtype)
    if T_pad != T:
        pad_t = [(0, 0), (0, T_pad - T), (0, 0)]
        units_p = jnp.pad(units_p, pad_t)
        fcond_p = jnp.pad(fcond_p, pad_t)

    w_unit = params["w_unit"].astype(compute_dtype)
    w_fv = w_fv.astype(compute_dtype)
    if Hp != H:
        w_unit = jnp.pad(w_unit, [(0, 0), (0, Hp - H)])
        w_fv = jnp.pad(w_fv, [(0, 0), (0, Hp - H)])
        bias = jnp.pad(bias, [(0, 0), (0, 0), (0, Hp - H)])

    grid = (B, T_pad // TT)

    def bt_map(b, t):
        return (b, t, 0)

    def b_map(b, t):
        return (b, 0, 0)

    def const_map(b, t):
        return (0, 0)

    itemsize = jnp.dtype(compute_dtype).itemsize
    cost = pl.CostEstimate(
        flops=2 * B * T_pad * (C + 2) * Hp,
        transcendentals=0,
        bytes_accessed=(B * T_pad * (C + 2) * itemsize            # units + fcond read
                        + B * T_pad * Hp * jnp.dtype(out_dtype).itemsize   # out write
                        + (C + 2) * Hp * itemsize + B * Hp * 4))  # weights + bias

    out = pl.pallas_call(
        _unit2mel_cond_kernel,
        out_shape=jax.ShapeDtypeStruct((B, T_pad, Hp), out_dtype),
        grid=grid,
        in_specs=[
            pl.BlockSpec((1, TT, C), bt_map),     # units
            pl.BlockSpec((1, TT, 2), bt_map),     # fcond = [log1p(f0/700), volume]
            pl.BlockSpec((1, 1, Hp), b_map),      # fused per-batch bias
            pl.BlockSpec((C, Hp), const_map),     # w_unit
            pl.BlockSpec((2, Hp), const_map),     # stacked [w_f0; w_vol]
        ],
        out_specs=pl.BlockSpec((1, TT, Hp), bt_map),
        compiler_params=pltpu.CompilerParams(
            dimension_semantics=("parallel", "parallel"),
            vmem_limit_bytes=vmem_limit_bytes),
        cost_estimate=cost,
    )(units_p, fcond_p, bias, w_unit, w_fv)

    if T_pad != T or Hp != H:
        out = out[:, :T, :H]
    return out


def ref_forward(units, f0, volume, spk_id, aug_shift, p):
    """Pure-JAX reference mirroring the PyTorch forward."""
    x = units @ p["w_unit"] + p["b_unit"]
    x = x + jnp.log(1.0 + f0 / 700.0) @ p["w_f0"] + p["b_f0"]
    x = x + volume @ p["w_vol"] + p["b_vol"]
    x = x + p["spk_table"][spk_id[:, 0]][:, None, :]          # spk_embed(spk_id)
    x = x + (aug_shift / 5.0) @ p["w_aug"]                    # aug_shift_embed
    return x


def init_params(key, input_channel, n_hidden, n_spk):
    ks = jax.random.split(key, 8)
    scale = 1.0 / np.sqrt(input_channel)
    return {
        # Linear(input_channel, n_hidden) stored as (C, H) == W^T
        "w_unit": jax.random.uniform(ks[0], (input_channel, n_hidden),
                                     jnp.float32, -scale, scale),
        "b_unit": jax.random.uniform(ks[1], (1, n_hidden), jnp.float32, -scale, scale),
        # Linear(1, n_hidden)
        "w_f0": jax.random.uniform(ks[2], (1, n_hidden), jnp.float32, -1.0, 1.0),
        "b_f0": jax.random.uniform(ks[3], (1, n_hidden), jnp.float32, -1.0, 1.0),
        "w_vol": jax.random.uniform(ks[4], (1, n_hidden), jnp.float32, -1.0, 1.0),
        "b_vol": jax.random.uniform(ks[5], (1, n_hidden), jnp.float32, -1.0, 1.0),
        # Linear(1, n_hidden, bias=False)
        "w_aug": jax.random.uniform(ks[6], (1, n_hidden), jnp.float32, -1.0, 1.0),
        # Embedding(n_spk, n_hidden)
        "spk_table": jax.random.normal(ks[7], (n_spk, n_hidden), jnp.float32),
    }


if __name__ == "__main__":
    # Small deterministic shapes consistent with the module's forward contract.
    B, T = 2, 48          # batch, n_frames
    C = 8                 # input_channel (n_unit)
    H = 256               # n_hidden (module default; lane-dense multiple of 128)
    n_spk = 4

    key = jax.random.PRNGKey(0)
    k_p, k_u, k_f, k_v, k_s, k_a = jax.random.split(key, 6)

    params = init_params(k_p, C, H, n_spk)

    units = jax.random.normal(k_u, (B, T, C), jnp.float32)
    f0 = jax.random.uniform(k_f, (B, T, 1), jnp.float32, 100.0, 400.0)
    volume = jax.random.uniform(k_v, (B, T, 1), jnp.float32, 0.0, 1.0)
    spk_id = jax.random.randint(k_s, (B, 1), 0, n_spk, jnp.int32)
    aug_shift = jax.random.uniform(k_a, (B, 1, 1), jnp.float32, -5.0, 5.0)

    out = unit2mel_forward(units, f0, volume, spk_id, aug_shift, params)
    out = jax.block_until_ready(out)

    ref = ref_forward(units, f0, volume, spk_id, aug_shift, params)
    np.testing.assert_allclose(np.asarray(out), np.asarray(ref),
                               rtol=1e-5, atol=1e-5)
    print("KERNEL_OK")
</pallas_src>

<mosaic_0001>
module attributes {stable_mosaic.version = 11 : i64} {
  func.func @_unit2mel_cond_kernel(%arg0: i32, %arg1: i32, %arg2: memref<1x48x8xf32, #tpu.memory_space<vmem>>, %arg3: memref<1x48x2xf32, #tpu.memory_space<vmem>>, %arg4: memref<1x1x256xf32, #tpu.memory_space<vmem>>, %arg5: memref<8x256xf32, #tpu.memory_space<vmem>>, %arg6: memref<2x256xf32, #tpu.memory_space<vmem>>, %arg7: memref<1x48x256xf32, #tpu.memory_space<vmem>>) attributes {dimension_semantics = [#tpu.dimension_semantics<parallel>, #tpu.dimension_semantics<parallel>], iteration_bounds = array<i64: 2, 1>, scalar_prefetch = 0 : i64, scratch_operands = 0 : i64, tpu.core_type = #tpu.core_type<tc>, window_params = [{transform_indices = @transform_0, window_bounds = array<i64: 1, 48, 8>}, {transform_indices = @transform_1, window_bounds = array<i64: 1, 48, 2>}, {transform_indices = @transform_2, window_bounds = array<i64: 1, 1, 256>}, {pipeline_mode = #tpu.pipeline_mode<synchronous>, transform_indices = @transform_3, window_bounds = array<i64: 8, 256>}, {pipeline_mode = #tpu.pipeline_mode<synchronous>, transform_indices = @transform_4, window_bounds = array<i64: 2, 256>}, {transform_indices = @transform_5, window_bounds = array<i64: 1, 48, 256>}]} {
    %c0 = arith.constant 0 : index
    %c0_0 = arith.constant 0 : index
    %c0_1 = arith.constant 0 : index
    %0 = vector.load %arg2[%c0, %c0_0, %c0_1] : memref<1x48x8xf32, #tpu.memory_space<vmem>>, vector<1x48x8xf32>
    %1 = vector.shape_cast %0 : vector<1x48x8xf32> to vector<48x8xf32>
    %c0_2 = arith.constant 0 : index
    %c0_3 = arith.constant 0 : index
    %2 = vector.load %arg5[%c0_2, %c0_3] : memref<8x256xf32, #tpu.memory_space<vmem>>, vector<8x256xf32>
    %cst = arith.constant dense<0.000000e+00> : vector<48x256xf32>
    %3 = tpu.matmul %1, %2, %cst {dimension_numbers = #tpu.dot_dimension_numbers<[1], [0], [0], [1], [0, 0, 1, 1], [], []>} : vector<48x8xf32>, vector<8x256xf32>, vector<48x256xf32> -> vector<48x256xf32>
    %c0_4 = arith.constant 0 : index
    %c0_5 = arith.constant 0 : index
    %c0_6 = arith.constant 0 : index
    %4 = vector.load %arg3[%c0_4, %c0_5, %c0_6] : memref<1x48x2xf32, #tpu.memory_space<vmem>>, vector<1x48x2xf32>
    %5 = vector.shape_cast %4 : vector<1x48x2xf32> to vector<48x2xf32>
    %c0_7 = arith.constant 0 : index
    %c0_8 = arith.constant 0 : index
    %6 = vector.load %arg6[%c0_7, %c0_8] : memref<2x256xf32, #tpu.memory_space<vmem>>, vector<2x256xf32>
    %cst_9 = arith.constant dense<0.000000e+00> : vector<48x256xf32>
    %7 = tpu.matmul %5, %6, %cst_9 {dimension_numbers = #tpu.dot_dimension_numbers<[1], [0], [0], [1], [0, 0, 1, 1], [], []>} : vector<48x2xf32>, vector<2x256xf32>, vector<48x256xf32> -> vector<48x256xf32>
    %8 = arith.addf %3, %7 : vector<48x256xf32>
    %c0_10 = arith.constant 0 : index
    %c0_11 = arith.constant 0 : index
    %c0_12 = arith.constant 0 : index
    %9 = vector.load %arg4[%c0_10, %c0_11, %c0_12] : memref<1x1x256xf32, #tpu.memory_space<vmem>>, vector<1x1x256xf32>
    %10 = vector.shape_cast %9 : vector<1x1x256xf32> to vector<1x256xf32>
    %11 = vector.broadcast %10 : vector<1x256xf32> to vector<48x256xf32>
    %12 = arith.addf %8, %11 : vector<48x256xf32>
    %c0_13 = arith.constant 0 : index
    %c0_14 = arith.constant 0 : index
    %c0_15 = arith.constant 0 : index
    %13 = vector.load %arg7[%c0_13, %c0_14, %c0_15] : memref<1x48x256xf32, #tpu.memory_space<vmem>>, vector<1x48x256xf32>
    %14 = vector.shape_cast %13 : vector<1x48x256xf32> to vector<48x256xf32>
    %15 = vector.shape_cast %12 : vector<48x256xf32> to vector<1x48x256xf32>
    tpu.vector_store %arg7[%c0_13, %c0_14, %c0_15], %15 {strides = array<i32>} : memref<1x48x256xf32, #tpu.memory_space<vmem>>, vector<1x48x256xf32>,
    return
  }
  func.func @transform_0(%arg0: i32, %arg1: i32) -> (i32, i32, i32) {
    %c0_i32 = arith.constant 0 : i32
    %c0_i32_0 = arith.constant 0 : i32
    return %arg0, %arg1, %c0_i32 : i32, i32, i32
  }
  func.func @transform_1(%arg0: i32, %arg1: i32) -> (i32, i32, i32) {
    %c0_i32 = arith.constant 0 : i32
    %c0_i32_0 = arith.constant 0 : i32
    return %arg0, %arg1, %c0_i32 : i32, i32, i32
  }
  func.func @transform_2(%arg0: i32, %arg1: i32) -> (i32, i32, i32) {
    %c0_i32 = arith.constant 0 : i32
    %c0_i32_0 = arith.constant 0 : i32
    %c0_i32_1 = arith.constant 0 : i32
    return %arg0, %c0_i32, %c0_i32_0 : i32, i32, i32
  }
  func.func @transform_3(%arg0: i32, %arg1: i32) -> (i32, i32) {
    %c0_i32 = arith.constant 0 : i32
    %c0_i32_0 = arith.constant 0 : i32
    %c0_i32_1 = arith.constant 0 : i32
    return %c0_i32, %c0_i32_0 : i32, i32
  }
  func.func @transform_4(%arg0: i32, %arg1: i32) -> (i32, i32) {
    %c0_i32 = arith.constant 0 : i32
    %c0_i32_0 = arith.constant 0 : i32
    %c0_i32_1 = arith.constant 0 : i32
    return %c0_i32, %c0_i32_0 : i32, i32
  }
  func.func @transform_5(%arg0: i32, %arg1: i32) -> (i32, i32, i32) {
    %c0_i32 = arith.constant 0 : i32
    %c0_i32_0 = arith.constant 0 : i32
    return %arg0, %arg1, %c0_i32 : i32, i32, i32
  }
}

</mosaic_0001>

<bundles_post_ra>
// kernel: tpu_custom_call.1
= control target key start
LH: loop header
LB: loop body
LE: loop exit
PB: predicated region body
PF: predicated region fallthrough
CT: control target
= control target key end

     0   :  { %10 = vsyncpa [#allocation3], 0  ;;  %s1117_s0 = inlined_call_operand.vmem [shape: f32[2,48,8], index: 0, kind: input, shape index: {}]   ;;  %s1118_s1 = inlined_call_operand.vmem [shape: f32[2,48,2], index: 1, kind: input, shape index: {}]   ;;  %s1119_s2 = inlined_call_operand.vmem [shape: f32[2,1,256], index: 2, kind: input, shape index: {}]   ;;  %s1120_s3 = inlined_call_operand.vmem [shape: f32[8,256], index: 3, kind: input, shape index: {}]   ;;  %s1121_s4 = inlined_call_operand.vmem [shape: f32[2,256], index: 4, kind: input, shape index: {}]   ;;  %s1122_s5 = inlined_call_operand.hbm [shape: f32[2,48,256], index: 5, kind: output, shape index: {}]  }
   0x1   :  { %12 = vsyncpa [#allocation3 + $0x1], 0  ;;  %s937_s18 = smov 0   ;;  %s939_s19 = smov 0  }
   0x2   :  { %s941_s20 = smov 0   ;;  %s943_s21 = smov 0  }
   0x3   :  { %s945_s22 = smov 0   ;;  %s947_s23 = smov 0  }
   0x4 LB: > { %s738_s24 = sadd.s32 4294967295, %s901_s23   ;;  %s739_s25 = sadd.s32 4294967294, %s901_s23   ;;  %s901_s23 = sphi %s947_s23, %s18_s23   ;;  %s897_s22 = sphi %s945_s22, %s1129_s22   ;;  %s893_s21 = sphi %s943_s21, %s1128_s21   ;;  %s889_s20 = sphi %s941_s20, %s1127_s20   ;;  %s885_s19 = sphi %s939_s19, %s1126_s19   ;;  %s881_s18 = sphi %s937_s18, %s1125_s18  }
   0x5   : > { %s30_s26 = sadd.s32 1, %s897_s22  ;;  %s163_s27 = sadd.s32 1, %s889_s20 }
   0x6   : > { %p32_p0 = scmp.ge.s32.totalorder %s30_s26, 2  ;;  %p173_p1 = scmp.ne.s32.totalorder %s889_s20, %s885_s19 }
   0x7   : > { %p174_p2 = scmp.eq.s32.totalorder %s738_s24, 1  ;;  %p179_p3 = scmp.ne.s32.totalorder %s885_s19, %s881_s18 }
   0x8   : > { %s1131_s26 = smov (%p32_p0, %s30_s26), 0  ;;  %p180_p5 = scmp.eq.s32.totalorder %s739_s25, 1 }
   0x9   : > { %p977_p4 = por %p174_p2, %p173_p1  ;;  %s158_s29 = ssub.s32 %s897_s22, %s1131_s26 }
   0xa   : > { %p742_p6 = scmp.ge.s32.totalorder %s901_s23, 1  ;;  %p161_p7 = scmp.eq.s32.totalorder %s158_s29, 0 }
   0xb   : > { %p984_p8 = por %p180_p5, %p179_p3  ;;  %p237_p9 = scmp.lt.s32.totalorder %s901_s23, 3 }
   0xc   : > { %s990_s6 = scalar_select %p161_p7, %s889_s20, %s163_s27  }
   0xd   : > { %p238_p10 = pnand %p742_p6, %p237_p9 }
   0xe   : > { %p283_p11 = scmp.lt.s32.totalorder (!%p238_p10), %s893_s21, 1  ;;  %s279_s10 = sand.u32 (!%p238_p10), 1, %s885_s19  }
   0xf   : > { %241 = sbr.rel (%p238_p10) target bundleno = 261 (0x105), region = 40  ;;  %s904_s25 = smov (!%p238_p10), [#allocation2]  }
  0x10   : > { %s764_s11 = smul.u32 (!%p238_p10), 96, %s279_s10 }
  0x12   : > { %s1047_s12 = scalar_lea.vmem (!%p238_p10), [#allocation2], %s764_s11 }
  0x14   : > { %v746_v0 = vld.sshfl [vmem:[%s1121_s4] sm:$0x33 pattern:$0x76325410]  ;;  %vm350_vm0 = vcmask 1041408   ;;  %v314_v1 = vld [vmem:[%s1120_s3 + $0x8] sm:$0xff]  ;;  %v578_v17 = vlaneseq }
  0x15   : > { %v330_v2 = vcombine.high %v746_v0, %v746_v0  ;;  %505 = vmatprep.subr.mxu1 %v314_v1  ;;  %v313_v3 = vld [vmem:[%s1120_s3] sm:$0xff]  ;;  %v903_v4 = vmov 0.0   ;;  %s1003_s13 = scalar_select %p283_p11, %s893_s21, 1  ;;  %vm331_vm1 = vcmask 15360   ;;  %vm456_vm2 = vcmask 64512  }
  0x16   : > { %419 = vmatprep.mubr.f32.mxu0 %v903_v4  ;;  %506 = vmatpush1.msra.mxu1 %v313_v3  ;;  %v579_v18 = vshrl.u32 %v578_v17, 7 }
  0x17   : > { %747 = vmatprep.subr.msk.mxu0 %vm350_vm0, %v330_v2  ;;  %539 = vmatprep.mubr.f32.mxu1 %v903_v4  ;;  %s765_s14 = smul.u32 48, %s1003_s13  ;;  %s745_s29 = sshll.u32 %s1003_s13, 1 }
  0x18   : > { %748 = vmatpush1.msk.msra.mxu0 %vm350_vm0, %v746_v0  ;;  %s305_s9 = scalar_lea.vmem %s1119_s2, %s745_s29  ;;  %v580_v19 = vsub.s32 0, %v579_v18  ;;  %v584_v21 = vsub.s32 1, %v579_v18  ;;  %s766_s13 = smul.u32 1536, %s893_s21 }
  0x19   : > { %s1009_s17 = scalar_lea.vmem %s1118_s1, %s765_s14  ;;  %s1014_s27 = scalar_lea.vmem %s1117_s0, %s765_s14  ;;  %v576_v20 = vld [vmem:[%s305_s9] sm:$0x3] }
  0x1a   : > { %v315_v5 = vld [vmem:[%s1009_s17] sm:$0xff]  ;;  %v316_v7 = vld [vmem:[%s1009_s17 + $0x8] sm:$0xff]  ;;  %v317_v9 = vld [vmem:[%s1009_s17 + $0x10] sm:$0xff]  ;;  %v581_v22 = vrot.slane %v576_v20, %v580_v19  ;;  %v585_v25 = vrot.slane %v576_v20, %v584_v21  ;;  %s629_s14 = sshll.u32 %s1047_s12, 4  ;;  %s1072_s21 = scalar_lea.sflag [#allocation3], %s279_s10  ;;  %s1066_s14 = int_to_ptr.vmem [resolvable:$true] %s629_s14 }
  0x1b   : > { %v307_v6 = vld [vmem:[%s1014_s27] sm:$0xff]  ;;  %749 = vmatmul.mubr.msk.f32.vlgmr.msra.gmra.mxu0 %vm331_vm1, %v315_v5  ;;  %v308_v8 = vld [vmem:[%s1014_s27 + $0x8] sm:$0xff]  ;;  %v309_v10 = vld [vmem:[%s1014_s27 + $0x10] sm:$0xff]  ;;  %s825_s24 = scalar_lea.vmem %s1066_s14, 1536 }
  0x1c   : > { %755 = vmatmul.mubr.msk.f32.vlgmr.msra.gmra.mxu1 %vm456_vm2, %v307_v6  ;;  %425 = vmatprep.mubr.f32.mxu0 %v903_v4  ;;  %v318_v11 = vld [vmem:[%s1009_s17 + $0x18] sm:$0xff]  ;;  %v319_v13 = vld [vmem:[%s1009_s17 + $0x20] sm:$0xff]  ;;  %v320_v15 = vld [vmem:[%s1009_s17 + $0x28] sm:$0xff]  ;;  %s1064_s17 = scalar_lea.hbm %s1122_s5, %s766_s13  ;;  %p826_p12 = scmp.ne.s32.totalorder %s1066_s14, %s825_s24 }
  0x1d   : > { %545 = vmatprep.mubr.f32.mxu1 %v903_v4  ;;  %v310_v12 = vld [vmem:[%s1014_s27 + $0x18] sm:$0xff]  ;;  %v311_v14 = vld [vmem:[%s1014_s27 + $0x20] sm:$0xff]  ;;  %v312_v16 = vld [vmem:[%s1014_s27 + $0x28] sm:$0xff]  ;;  %s829_s27 = sshll.u32 %s904_s25, 4  ;;  %s830_s27 = int_to_ptr.vmem [resolvable:$false] %s829_s27 }
  0x1e   : > { %p827_p13 = pnand %p826_p12, %p977_p4  ;;  %s831_s29 = scalar_lea.vmem %s830_s27, 3072 }
  0x1f   : > { %750 = vmatmul.mubr.msk.f32.gmra.mxu0 %vm331_vm1, %v316_v7  ;;  %p832_p1 = scmp.lt.s32.totalorder %s1066_s14, %s830_s27  ;;  %p833_p2 = scmp.lt.s32.totalorder %s831_s29, %s825_s24 }
  0x20   : > { %756 = vmatmul.mubr.msk.f32.gmra.mxu1 %vm456_vm2, %v308_v8  ;;  %431 = vmatprep.mubr.f32.mxu0 %v903_v4  ;;  %p828_p0 = pneg %p827_p13 }
  0x21   : > { %551 = vmatprep.mubr.f32.mxu1 %v903_v4  ;;  %p834_p3 = por %p833_p2, %p832_p1 }
  0x23   : > { %751 = vmatmul.mubr.msk.f32.gmra.mxu0 %vm331_vm1, %v317_v9  ;;  %p835_p5 = pnand %p834_p3, %p828_p0 }
  0x24   : > { %757 = vmatmul.mubr.msk.f32.gmra.mxu1 %vm456_vm2, %v309_v10  ;;  %437 = vmatprep.mubr.f32.mxu0 %v903_v4 }
  0x25   : > { %557 = vmatprep.mubr.f32.mxu1 %v903_v4 }
  0x27   : > { %752 = vmatmul.mubr.msk.f32.gmra.mxu0 %vm331_vm1, %v318_v11 }
  0x28   : > { %758 = vmatmul.mubr.msk.f32.gmra.mxu1 %vm456_vm2, %v310_v12  ;;  %443 = vmatprep.mubr.f32.mxu0 %v903_v4 }
  0x29   : > { %563 = vmatprep.mubr.f32.mxu1 %v903_v4 }
  0x2b   : > { %753 = vmatmul.mubr.msk.f32.gmra.mxu0 %vm331_vm1, %v319_v13 }
  0x2c   : > { %759 = vmatmul.mubr.msk.f32.gmra.mxu1 %vm456_vm2, %v311_v14  ;;  %449 = vmatprep.mubr.f32.mxu0 %v903_v4 }
  0x2d   : > { %569 = vmatprep.mubr.f32.mxu1 %v903_v4 }
  0x2f   : > { %754 = vmatmul.mubr.msk.f32.gmra.mxu0 %vm331_vm1, %v320_v15 }
  0x30   : > { %760 = vmatmul.mubr.msk.f32.gmra.mxu1 %vm456_vm2, %v312_v16 }
  0xdb   : > { %v421_v23 = vpop.f32.mrf.mxu0 }
  0xdc   : > { %v541_v24 = vpop.f32.mrf.mxu1 }
  0xdd   : > { %v542_v26 = vadd.f32 %v541_v24, %v421_v23  ;;  %v423_v27 = vpop.f32.mrf.mxu0 }
  0xde   : > { %v543_v28 = vpop.f32.mrf.mxu1 }
  0xdf   : > { %v588_v29 = vadd.f32 %v581_v22, %v542_v26  ;;  %v544_v30 = vadd.f32 %v543_v28, %v423_v27  ;;  %v427_v31 = vpop.f32.mrf.mxu0 }
  0xe0   : > { %v547_v32 = vpop.f32.mrf.mxu1 }
  0xe1   : > { %600 = vst [vmem:[%s1047_s12] sm:$0xff] %v588_v29  ;;  %v589_v33 = vadd.f32 %v585_v25, %v544_v30  ;;  %v548_v34 = vadd.f32 %v547_v32, %v427_v31  ;;  %v429_v35 = vpop.f32.mrf.mxu0 }
  0xe2   : > { %v549_v36 = vpop.f32.mrf.mxu1 }
  0xe3   : > { %601 = vst [vmem:[%s1047_s12 + $0x8] sm:$0xff] %v589_v33  ;;  %v590_v37 = vadd.f32 %v581_v22, %v548_v34  ;;  %v550_v38 = vadd.f32 %v549_v36, %v429_v35  ;;  %v433_v39 = vpop.f32.mrf.mxu0 }
  0xe4   : > { %v553_v40 = vpop.f32.mrf.mxu1 }
  0xe5   : > { %602 = vst [vmem:[%s1047_s12 + $0x10] sm:$0xff] %v590_v37  ;;  %v591_v41 = vadd.f32 %v585_v25, %v550_v38  ;;  %v554_v42 = vadd.f32 %v553_v40, %v433_v39  ;;  %v435_v43 = vpop.f32.mrf.mxu0 }
  0xe6   : > { %v555_v44 = vpop.f32.mrf.mxu1 }
  0xe7   : > { %603 = vst [vmem:[%s1047_s12 + $0x18] sm:$0xff] %v591_v41  ;;  %v592_v45 = vadd.f32 %v581_v22, %v554_v42  ;;  %v556_v46 = vadd.f32 %v555_v44, %v435_v43  ;;  %v439_v47 = vpop.f32.mrf.mxu0 }
  0xe8   : > { %v559_v48 = vpop.f32.mrf.mxu1 }
  0xe9   : > { %604 = vst [vmem:[%s1047_s12 + $0x20] sm:$0xff] %v592_v45  ;;  %v593_v49 = vadd.f32 %v585_v25, %v556_v46  ;;  %v560_v50 = vadd.f32 %v559_v48, %v439_v47  ;;  %v441_v51 = vpop.f32.mrf.mxu0 }
  0xea   : > { %v561_v52 = vpop.f32.mrf.mxu1 }
  0xeb   : > { %605 = vst [vmem:[%s1047_s12 + $0x28] sm:$0xff] %v593_v49  ;;  %v594_v53 = vadd.f32 %v581_v22, %v560_v50  ;;  %v562_v54 = vadd.f32 %v561_v52, %v441_v51  ;;  %v445_v55 = vpop.f32.mrf.mxu0 }
  0xec   : > { %v565_v56 = vpop.f32.mrf.mxu1 }
  0xed   : > { %606 = vst [vmem:[%s1047_s12 + $0x30] sm:$0xff] %v594_v53  ;;  %v595_v57 = vadd.f32 %v585_v25, %v562_v54  ;;  %v566_v58 = vadd.f32 %v565_v56, %v445_v55  ;;  %v447_v59 = vpop.f32.mrf.mxu0 }
  0xee   : > { %v567_v60 = vpop.f32.mrf.mxu1 }
  0xef   : > { %607 = vst [vmem:[%s1047_s12 + $0x38] sm:$0xff] %v595_v57  ;;  %v596_v61 = vadd.f32 %v581_v22, %v566_v58  ;;  %v568_v62 = vadd.f32 %v567_v60, %v447_v59  ;;  %v451_v63 = vpop.f32.mrf.mxu0 }
  0xf0   : > { %v571_v0 = vpop.f32.mrf.mxu1 }
  0xf1   : > { %608 = vst [vmem:[%s1047_s12 + $0x40] sm:$0xff] %v596_v61  ;;  %v597_v1 = vadd.f32 %v585_v25, %v568_v62  ;;  %v572_v2 = vadd.f32 %v571_v0, %v451_v63  ;;  %v453_v3 = vpop.f32.mrf.mxu0 }
  0xf2   : > { %v573_v4 = vpop.f32.mrf.mxu1 }
  0xf3   : > { %609 = vst [vmem:[%s1047_s12 + $0x48] sm:$0xff] %v597_v1  ;;  %v598_v5 = vadd.f32 %v581_v22, %v572_v2  ;;  %v574_v6 = vadd.f32 %v573_v4, %v453_v3 }
  0xf5   : > { %610 = vst [vmem:[%s1047_s12 + $0x50] sm:$0xff] %v598_v5  ;;  %v599_v7 = vadd.f32 %v585_v25, %v574_v6 }
  0xf7   : > { %611 = vst [vmem:[%s1047_s12 + $0x58] sm:$0xff] %v599_v7 }
  0xf8   : > { %838 = shalt.err (!%p835_p5)
}
  0xf9   : > { %s839_s7 = scalar_lea.hbm %s1064_s17, 1536  ;;  %s843_s10 = scalar_lea.hbm %s1122_s5, 3072 }
  0xfa   : > { %p840_p6 = scmp.ne.s32.totalorder %s1064_s17, %s839_s7  ;;  %p844_p10 = scmp.lt.s32.totalorder %s1064_s17, %s1122_s5 }
  0xfb   : > { %p845_p11 = scmp.lt.s32.totalorder %s843_s10, %s839_s7 }
  0xfc   : > { %p841_p7 = pnand %p840_p6, %p977_p4 }
  0xfd   : > { %p846_p12 = por %p845_p11, %p844_p10 }
  0xfe   : > { %p842_p9 = pneg %p841_p7 }
 0x100   : > { %p847_p13 = pnand %p846_p12, %p842_p9 }
 0x102   : > { %850 = shalt.err (!%p847_p13)
}
 0x103   : > { %s905_s13 = smov 256   ;;  %s906_s15 = smov 16  }
 0x104   : > { %767 = dma.vmem_to_hbm [thread:$0]  (%p977_p4), %s1066_s14, 1536, %s1064_s17, %s1072_s21, %s905_s13, %s905_s13, %s906_s15  }
 0x105 PF: > { %p773_p0 = scmp.ge.s32.totalorder %s901_s23, 2  ;;  %s644_s16 = sand.u32 1, %s881_s18  }
 0x106   : > { %s645_s24 = scalar_lea.sflag [#allocation3], %s644_s16 }
 0x107   : > { %p770_p1 = pnand %p773_p0, %p984_p8 }
 0x109   : > { %p771_p2 = pneg %p770_p1 }
 0x10b   : > { %876 = dma.done.wait (%p771_p2), %s645_s24, 1536  }
 0x10c   : > { %878 = vsyncadd (%p771_p2), %s645_s24, 4294965760  ;;  %s18_s23 = sadd.s32 1, %s901_s23   ;;  %s1125_s18 = smov %s885_s19 }
 0x10d   : > { %p15_p3 = scmp.ge.s32.totalorder %s18_s23, 4   ;;  %s1126_s19 = smov %s889_s20 }
 0x10e   : > { %s1127_s20 = smov %s990_s6  ;;  %s1128_s21 = smov %s897_s22 }
 0x10f   : > { %s1129_s22 = smov %s1131_s26  ;;  %17 = sbr.rel (!%p15_p3) target bundleno = 4 (0x4), region = 81 }
 0x114   :  { %650 = vsyncpa [#allocation3], 1 }
 0x115   :  { %652 = vsyncpa [#allocation3 + $0x1], 1 }

</bundles_post_ra>
